<compile_context>
chip_gen: v7x
topology: tpu7x:2x2x1
jax: 0.10.0
libtpu: 0.0.40
codegen_flags: <defaults>
</compile_context>

<pallas_src>
import numpy as np
import jax
import jax.numpy as jnp
from jax.experimental import pallas as pl
from jax.experimental.pallas import tpu as pltpu

LN_EPS = 1e-5  # torch.nn.LayerNorm default


# ----------------------------------------------------------------------------
# Feature / hardware probes (wrapper-side only; no broad try/except around the
# actual kernel build so real lowering or VMEM errors surface loudly).
# ----------------------------------------------------------------------------
def _supports_pipeline_mode():
    if not hasattr(pl, "Buffered"):
        return False
    try:
        pl.BlockSpec((8, 128), lambda i: (0, 0), pipeline_mode=pl.Buffered(1))
    except TypeError:
        return False
    return True


_SUPPORTS_PIPELINE_MODE = _supports_pipeline_mode()


def _tpu_topology():
    """(TensorCores per chip, VMEM budget cap in bytes) from the device kind."""
    try:
        kind = jax.devices()[0].device_kind.lower()
    except Exception:
        kind = ""
    if "v7" in kind or "7x" in kind:
        # v7x: 2 TCs/chip, 64 MiB physical VMEM per TC -> leave Mosaic headroom.
        return 2, 56 * (1 << 20)
    # v5e / v6e: single TensorCore, 128 MiB physical VMEM.
    return 1, 100 * (1 << 20)


def _pick_batch_tile(batch, seq, num_cores, target_rows):
    """Largest divisor of `batch` with Bt*seq <= target_rows (fills the MXU M
    dimension).  On multi-TC chips (v7x) prefer a grid whose step count is a
    multiple of the core count so dimension_semantics=("parallel",) gives both
    cores balanced work; on single-TC chips extra grid steps are pure per-step
    overhead, so just take the fattest tile."""
    best = 1
    for cand in range(1, batch + 1):
        if batch % cand == 0 and cand * seq <= target_rows:
            best = cand
    if num_cores > 1 and batch % num_cores == 0:
        for cand in range(best, 0, -1):
            if batch % cand == 0 and (batch // cand) % num_cores == 0:
                best = cand
                break
    return best


# ----------------------------------------------------------------------------
# Kernel
# ----------------------------------------------------------------------------
def _layer_norm(x, gamma, beta):
    # Two-pass variance (closer to torch.nn.LayerNorm); gamma folded into the
    # rsqrt factor to save one rows x D VPU multiply per call.
    mu = jnp.mean(x, axis=-1, keepdims=True)
    xc = x - mu
    var = jnp.mean(xc * xc, axis=-1, keepdims=True)
    return xc * (jax.lax.rsqrt(var + LN_EPS) * gamma) + beta


def encoder_kernel(x_ref,                       # (Bt, L, D)  bf16
                   g1_ref, b1_ref,              # (1, D) f32   input_norm
                   wqkv_ref,                    # (D, 3D) bf16, scale folded into Wq
                   g2_ref, b2_ref,              # (1, D) f32   middle_norm
                   wf1_ref, bf1_ref,            # (D, F) bf16, (1, F) f32
                   wf2_ref, bf2_ref,            # (F, D) bf16, (1, D) f32
                   o_ref):                      # (Bt, L, D)  f32
    bt, seq, d = x_ref.shape
    rows = bt * seq

    # Cast to f32 FIRST so the (Bt, L, D) -> (rows, D) collapse is a pure
    # layout no-op (seq is a multiple of the f32 sublane tile of 8).
    x = x_ref[...].astype(jnp.float32).reshape(rows, d)

    # --- input LayerNorm (f32) ---
    xn = _layer_norm(x, g1_ref[...], b1_ref[...])

    # --- fused QKV projection: one bf16 MXU matmul, M = Bt*L rows, f32 accum ---
    qkv = jnp.dot(xn.astype(jnp.bfloat16), wqkv_ref[...],
                  preferred_element_type=jnp.float32)              # (rows, 3D) f32
    q = qkv[:, :d].reshape(bt, seq, d)          # 1/sqrt(d_model) folded into Wq
    k = qkv[:, d:2 * d].reshape(bt, seq, d)
    v = qkv[:, 2 * d:].reshape(bt, seq, d)

    # --- per-sequence single-head attention (mask=None), all in f32: these
    #     contractions are tiny (depth L / D), bf16 casts were pure overhead ---
    scores = jnp.einsum("bld,bmd->blm", q, k,
                        preferred_element_type=jnp.float32)        # (bt, L, L)
    m = jnp.max(scores, axis=-1, keepdims=True)
    p = jnp.exp(scores - m)
    l = jnp.sum(p, axis=-1, keepdims=True)
    w = p * pl.reciprocal(l, approx=True)                          # softmax (EUP)
    attn = jnp.einsum("blm,bmd->bld", w, v,
                      preferred_element_type=jnp.float32)
    attn = attn.reshape(rows, d)

    # --- residual + middle LayerNorm (dropout1 identity, p=0) ---
    x2 = _layer_norm(attn + xn, g2_ref[...], b2_ref[...])

    # --- feed-forward: Linear -> ReLU -> Linear (bf16 matmuls, f32 accum) ---
    h = jnp.dot(x2.astype(jnp.bfloat16), wf1_ref[...],
                preferred_element_type=jnp.float32) + bf1_ref[...]
    h = jnp.maximum(h, 0.0)
    ff = jnp.dot(h.astype(jnp.bfloat16), wf2_ref[...],
                 preferred_element_type=jnp.float32) + bf2_ref[...]

    # --- residual (dropout2 identity), f32 store ---
    o_ref[...] = (ff + x2).reshape(bt, seq, d).astype(o_ref.dtype)


# ----------------------------------------------------------------------------
# Wrapper
# ----------------------------------------------------------------------------
def _prepare_kernel_params(p, d_model):
    """Fold the attention scale into Wq, fuse QKV, cast matmul weights to bf16
    (once, host-side).  LayerNorm params and biases stay f32."""
    scale = 1.0 / np.sqrt(d_model)   # d_model // n_heads with n_heads == 1
    wqkv = jnp.concatenate([p["wq"] * scale, p["wk"], p["wv"]],
                           axis=1).astype(jnp.bfloat16)
    return {
        "g1": p["g1"], "b1": p["b1"],
        "wqkv": wqkv,
        "g2": p["g2"], "b2": p["b2"],
        "wf1": p["wf1"].astype(jnp.bfloat16), "bf1": p["bf1"],
        "wf2": p["wf2"].astype(jnp.bfloat16), "bf2": p["bf2"],
    }


def sparse_transformer_encoder(x, params, *, batch_tile=None):
    """x: (B, L, D) float; params: dict from init_params (f32, x @ W layout)."""
    B, L, D = x.shape
    F = params["wf1"].shape[1]

    # In-kernel (Bt, L, D) <-> (Bt*L, D) collapses are layout no-ops only when
    # L is a multiple of the f32 sublane tile.
    assert L % 8 == 0, "sequence length must be a multiple of 8"
    # TODO(synk): generalize to L % 8 != 0 by keeping 3-D batched matmuls
    # (no row-collapse) at a small MXU M-fill cost.

    kp = _prepare_kernel_params(params, D)
    # Activations cross the boundary in bf16 (halves per-step input DMA);
    # statistics are recomputed in f32 inside the kernel.
    x_in = x.astype(jnp.bfloat16)

    num_cores, vmem_cap = _tpu_topology()
    target_rows = 2048 if num_cores == 1 else 1024
    Bt = batch_tile if batch_tile is not None else _pick_batch_tile(
        B, L, num_cores, target_rows)
    assert B % Bt == 0, "batch_tile must divide the batch size"
    grid = (B // Bt,)

    # Weight / bias operands (grid-invariant), in kernel-argument order.
    weight_args = [kp["g1"], kp["b1"], kp["wqkv"], kp["g2"], kp["b2"],
                   kp["wf1"], kp["bf1"], kp["wf2"], kp["bf2"]]
    weight_bytes = sum(int(a.size) * a.dtype.itemsize for a in weight_args)

    # Single-buffer grid-invariant weights only when it actually saves VMEM
    # that matters (and the installed JAX supports pipeline_mode).  Feature
    # check instead of a blanket try/except so real errors are not swallowed.
    single_buffer = _SUPPORTS_PIPELINE_MODE and weight_bytes >= (1 << 20)

    def const_spec(shape):
        if single_buffer:
            return pl.BlockSpec(shape, lambda b: (0, 0),
                                pipeline_mode=pl.Buffered(1))
        return pl.BlockSpec(shape, lambda b: (0, 0))

    in_specs = [pl.BlockSpec((Bt, L, D), lambda b: (b, 0, 0))] + \
               [const_spec(a.shape) for a in weight_args]
    out_spec = pl.BlockSpec((Bt, L, D), lambda b: (b, 0, 0))

    # Advisory cost estimate for the XLA scheduler.
    flops = (2 * B * L * D * (3 * D)            # fused QKV projection
             + 2 * 2 * B * L * L * D            # scores + attn @ V
             + 2 * 2 * B * L * D * F)           # FFN
    transcendentals = B * L * L + 4 * B * L     # exp + rsqrt / reciprocal
    bytes_accessed = B * L * D * (2 + 4) + weight_bytes
    cost = pl.CostEstimate(flops=int(flops),
                           transcendentals=int(transcendentals),
                           bytes_accessed=int(bytes_accessed))

    # VMEM budget: weights counted once when single-buffered, double-buffered
    # x / out blocks, rough f32 intermediates; clamped to the per-chip cap.
    in_block = Bt * L * D * x_in.dtype.itemsize
    out_block = Bt * L * D * 4
    weight_buf = weight_bytes * (1 if single_buffer else 2)
    inter_bytes = Bt * L * (6 * D + 2 * F) * 4 + 2 * Bt * L * L * 4
    need = weight_buf + 2 * (in_block + out_block) + inter_bytes
    vmem_limit = int(min(vmem_cap, max(32 * (1 << 20), 2 * need)))
    # TODO(synk): for production D/F where bf16 weights alone exceed ~vmem_cap/2
    # (e.g. D=2048, F=8192 on v7x), keep wf1/wf2 in HBM (memory_space=pl.ANY)
    # and stream K/F blocks with pltpu.emit_pipeline instead of holding them
    # resident.

    call = pl.pallas_call(
        encoder_kernel,
        out_shape=jax.ShapeDtypeStruct((B, L, D), jnp.float32),
        grid_spec=pltpu.PrefetchScalarGridSpec(
            num_scalar_prefetch=0,
            grid=grid,
            in_specs=in_specs,
            out_specs=out_spec,
        ),
        compiler_params=pltpu.CompilerParams(
            dimension_semantics=("parallel",),
            vmem_limit_bytes=vmem_limit),
        cost_estimate=cost,
    )
    return call(x_in, *weight_args)


# ----------------------------------------------------------------------------
# Parameters / reference
# ----------------------------------------------------------------------------
def init_params(key, d_model, dim_feedforward):
    """Deterministic init mirroring the PyTorch module's _initialize():
       attention / ff weights ~ N(0, 0.1^2), ff biases = 0, LayerNorm gamma=1,
       beta=0.  PyTorch Linear weights are (out, in); stored transposed (in, out)."""
    ks = jax.random.split(key, 5)
    std = 0.1
    wq = jax.random.normal(ks[0], (d_model, d_model), jnp.float32) * std
    wk = jax.random.normal(ks[1], (d_model, d_model), jnp.float32) * std
    wv = jax.random.normal(ks[2], (d_model, d_model), jnp.float32) * std
    wf1 = jax.random.normal(ks[3], (dim_feedforward, d_model), jnp.float32) * std
    wf2 = jax.random.normal(ks[4], (d_model, dim_feedforward), jnp.float32) * std
    return {
        "g1": jnp.ones((1, d_model), jnp.float32),
        "b1": jnp.zeros((1, d_model), jnp.float32),
        "wq": wq.T, "wk": wk.T, "wv": wv.T,            # (in, out) for x @ W
        "g2": jnp.ones((1, d_model), jnp.float32),
        "b2": jnp.zeros((1, d_model), jnp.float32),
        "wf1": wf1.T,                                   # (d_model, dim_ff)
        "bf1": jnp.zeros((1, dim_feedforward), jnp.float32),
        "wf2": wf2.T,                                   # (dim_ff, d_model)
        "bf2": jnp.zeros((1, d_model), jnp.float32),
    }


def _reference(x, p):
    """Pure-JAX f32 mirror of the PyTorch forward (n_heads=1, dropout=0, mask=None)."""
    def ln(x, g, b):
        mu = x.mean(-1, keepdims=True)
        var = ((x - mu) ** 2).mean(-1, keepdims=True)
        return (x - mu) / jnp.sqrt(var + LN_EPS) * g + b
    d = x.shape[-1]
    xn = ln(x, p["g1"], p["b1"])
    q, k, v = xn @ p["wq"], xn @ p["wk"], xn @ p["wv"]
    w = jax.nn.softmax(jnp.einsum("bld,bmd->blm", q, k) / np.sqrt(d), axis=-1)
    attn = jnp.einsum("blm,bmd->bld", w, v)
    x2 = ln(attn + xn, p["g2"], p["b2"])
    h = jnp.maximum(x2 @ p["wf1"] + p["bf1"], 0.0)
    return h @ p["wf2"] + p["bf2"] + x2


if __name__ == "__main__":
    B, L, D, FF = 4, 8, 32, 64
    key = jax.random.PRNGKey(0)
    k_x, k_p = jax.random.split(key)
    x = jax.random.normal(k_x, (B, L, D), jnp.float32)
    params = init_params(k_p, D, FF)

    out = sparse_transformer_encoder(x, params)
    out = jax.block_until_ready(out)

    ref = _reference(x, params)
    # bf16 boundary activations + bf16 MXU weights + approx reciprocal give
    # ~1e-2-scale differences vs the f32 reference; 3e-2 still catches any
    # real semantic bug.
    np.testing.assert_allclose(np.asarray(out), np.asarray(ref),
                               rtol=3e-2, atol=3e-2)

    print("KERNEL_OK")
</pallas_src>

<mosaic_0001>
module attributes {stable_mosaic.version = 11 : i64} {
  func.func @encoder_kernel(%arg0: i32, %arg1: memref<4x8x32xbf16, #tpu.memory_space<vmem>>, %arg2: memref<1x32xf32, #tpu.memory_space<vmem>>, %arg3: memref<1x32xf32, #tpu.memory_space<vmem>>, %arg4: memref<32x96xbf16, #tpu.memory_space<vmem>>, %arg5: memref<1x32xf32, #tpu.memory_space<vmem>>, %arg6: memref<1x32xf32, #tpu.memory_space<vmem>>, %arg7: memref<32x64xbf16, #tpu.memory_space<vmem>>, %arg8: memref<1x64xf32, #tpu.memory_space<vmem>>, %arg9: memref<64x32xbf16, #tpu.memory_space<vmem>>, %arg10: memref<1x32xf32, #tpu.memory_space<vmem>>, %arg11: memref<4x8x32xf32, #tpu.memory_space<vmem>>) attributes {dimension_semantics = [#tpu.dimension_semantics<parallel>], iteration_bounds = array<i64: 1>, scalar_prefetch = 0 : i64, scratch_operands = 0 : i64, tpu.core_type = #tpu.core_type<tc>, window_params = [{transform_indices = @transform_0, window_bounds = array<i64: 4, 8, 32>}, {pipeline_mode = #tpu.pipeline_mode<synchronous>, transform_indices = @transform_1, window_bounds = array<i64: 1, 32>}, {pipeline_mode = #tpu.pipeline_mode<synchronous>, transform_indices = @transform_2, window_bounds = array<i64: 1, 32>}, {pipeline_mode = #tpu.pipeline_mode<synchronous>, transform_indices = @transform_3, window_bounds = array<i64: 32, 96>}, {pipeline_mode = #tpu.pipeline_mode<synchronous>, transform_indices = @transform_4, window_bounds = array<i64: 1, 32>}, {pipeline_mode = #tpu.pipeline_mode<synchronous>, transform_indices = @transform_5, window_bounds = array<i64: 1, 32>}, {pipeline_mode = #tpu.pipeline_mode<synchronous>, transform_indices = @transform_6, window_bounds = array<i64: 32, 64>}, {pipeline_mode = #tpu.pipeline_mode<synchronous>, transform_indices = @transform_7, window_bounds = array<i64: 1, 64>}, {pipeline_mode = #tpu.pipeline_mode<synchronous>, transform_indices = @transform_8, window_bounds = array<i64: 64, 32>}, {pipeline_mode = #tpu.pipeline_mode<synchronous>, transform_indices = @transform_9, window_bounds = array<i64: 1, 32>}, {transform_indices = @transform_10, window_bounds = array<i64: 4, 8, 32>}]} {
    %c0 = arith.constant 0 : index
    %c0_0 = arith.constant 0 : index
    %c0_1 = arith.constant 0 : index
    %0 = vector.load %arg1[%c0, %c0_0, %c0_1] : memref<4x8x32xbf16, #tpu.memory_space<vmem>>, vector<4x8x32xbf16>
    %1 = arith.extf %0 : vector<4x8x32xbf16> to vector<4x8x32xf32>
    %2 = vector.shape_cast %1 : vector<4x8x32xf32> to vector<32x32xf32>
    %c0_2 = arith.constant 0 : index
    %c0_3 = arith.constant 0 : index
    %3 = vector.load %arg2[%c0_2, %c0_3] : memref<1x32xf32, #tpu.memory_space<vmem>>, vector<1x32xf32>
    %c0_4 = arith.constant 0 : index
    %c0_5 = arith.constant 0 : index
    %4 = vector.load %arg3[%c0_4, %c0_5] : memref<1x32xf32, #tpu.memory_space<vmem>>, vector<1x32xf32>
    %cst = arith.constant dense<0.000000e+00> : vector<32xf32>
    %5 = vector.multi_reduction <add>, %2, %cst [1] : vector<32x32xf32> to vector<32xf32>
    %6 = vector.shape_cast %5 : vector<32xf32> to vector<32x1xf32>
    %cst_6 = arith.constant 3.200000e+01 : f32
    %7 = vector.broadcast %cst_6 : f32 to vector<32x1xf32>
    %8 = arith.divf %6, %7 : vector<32x1xf32>
    %9 = vector.broadcast %8 : vector<32x1xf32> to vector<32x32xf32>
    %10 = arith.subf %2, %9 : vector<32x32xf32>
    %11 = arith.mulf %10, %10 : vector<32x32xf32>
    %cst_7 = arith.constant dense<0.000000e+00> : vector<32xf32>
    %12 = vector.multi_reduction <add>, %11, %cst_7 [1] : vector<32x32xf32> to vector<32xf32>
    %13 = vector.shape_cast %12 : vector<32xf32> to vector<32x1xf32>
    %cst_8 = arith.constant 3.200000e+01 : f32
    %14 = vector.broadcast %cst_8 : f32 to vector<32x1xf32>
    %15 = arith.divf %13, %14 : vector<32x1xf32>
    %cst_9 = arith.constant 9.99999974E-6 : f32
    %16 = vector.broadcast %cst_9 : f32 to vector<32x1xf32>
    %17 = arith.addf %15, %16 : vector<32x1xf32>
    %18 = math.rsqrt %17 : vector<32x1xf32>
    %19 = vector.broadcast %18 : vector<32x1xf32> to vector<32x32xf32>
    %20 = vector.broadcast %3 : vector<1x32xf32> to vector<32x32xf32>
    %21 = arith.mulf %19, %20 : vector<32x32xf32>
    %22 = arith.mulf %10, %21 : vector<32x32xf32>
    %23 = vector.broadcast %4 : vector<1x32xf32> to vector<32x32xf32>
    %24 = arith.addf %22, %23 : vector<32x32xf32>
    %25 = arith.truncf %24 : vector<32x32xf32> to vector<32x32xbf16>
    %c0_10 = arith.constant 0 : index
    %c0_11 = arith.constant 0 : index
    %26 = vector.load %arg4[%c0_10, %c0_11] : memref<32x96xbf16, #tpu.memory_space<vmem>>, vector<32x96xbf16>
    %cst_12 = arith.constant dense<0.000000e+00> : vector<32x96xf32>
    %27 = tpu.matmul %25, %26, %cst_12 {dimension_numbers = #tpu.dot_dimension_numbers<[1], [0], [0], [1], [0, 0, 1, 1], [], []>} : vector<32x32xbf16>, vector<32x96xbf16>, vector<32x96xf32> -> vector<32x96xf32>
    %28 = vector.extract_strided_slice %27 {offsets = [0, 0], sizes = [32, 32], strides = [1, 1]} : vector<32x96xf32> to vector<32x32xf32>
    %29 = vector.shape_cast %28 : vector<32x32xf32> to vector<4x8x32xf32>
    %30 = vector.extract_strided_slice %27 {offsets = [0, 32], sizes = [32, 32], strides = [1, 1]} : vector<32x96xf32> to vector<32x32xf32>
    %31 = vector.shape_cast %30 : vector<32x32xf32> to vector<4x8x32xf32>
    %32 = vector.extract_strided_slice %27 {offsets = [0, 64], sizes = [32, 32], strides = [1, 1]} : vector<32x96xf32> to vector<32x32xf32>
    %33 = vector.shape_cast %32 : vector<32x32xf32> to vector<4x8x32xf32>
    "tpu.trace_start"() <{level = 10 : i32, message = "bld,bmd->blm"}> : () -> ()
    %cst_13 = arith.constant dense<0.000000e+00> : vector<4x8x8xf32>
    %34 = tpu.matmul %29, %31, %cst_13 {dimension_numbers = #tpu.dot_dimension_numbers<[2], [2], [1], [1], [0, 0, 0, 1, 1, 1], [0], [0]>} : vector<4x8x32xf32>, vector<4x8x32xf32>, vector<4x8x8xf32> -> vector<4x8x8xf32>
    "tpu.trace_stop"() : () -> ()
    %cst_14 = arith.constant dense<0xFF800000> : vector<4x8xf32>
    %35 = vector.multi_reduction <maximumf>, %34, %cst_14 [2] : vector<4x8x8xf32> to vector<4x8xf32>
    %36 = vector.shape_cast %35 : vector<4x8xf32> to vector<4x8x1xf32>
    %37 = vector.broadcast %36 : vector<4x8x1xf32> to vector<4x8x8xf32>
    %38 = arith.subf %34, %37 : vector<4x8x8xf32>
    %39 = math.exp %38 : vector<4x8x8xf32>
    %cst_15 = arith.constant dense<0.000000e+00> : vector<4x8xf32>
    %40 = vector.multi_reduction <add>, %39, %cst_15 [2] : vector<4x8x8xf32> to vector<4x8xf32>
    %41 = vector.shape_cast %40 : vector<4x8xf32> to vector<4x8x1xf32>
    %42 = tpu.reciprocal %41 {approx = true} : vector<4x8x1xf32> -> vector<4x8x1xf32>
    %43 = vector.broadcast %42 : vector<4x8x1xf32> to vector<4x8x8xf32>
    %44 = arith.mulf %39, %43 : vector<4x8x8xf32>
    "tpu.trace_start"() <{level = 10 : i32, message = "blm,bmd->bld"}> : () -> ()
    %cst_16 = arith.constant dense<0.000000e+00> : vector<4x8x32xf32>
    %45 = tpu.matmul %44, %33, %cst_16 {dimension_numbers = #tpu.dot_dimension_numbers<[2], [1], [1], [2], [0, 0, 0, 1, 1, 2], [0], [0]>} : vector<4x8x8xf32>, vector<4x8x32xf32>, vector<4x8x32xf32> -> vector<4x8x32xf32>
    "tpu.trace_stop"() : () -> ()
    %46 = vector.shape_cast %45 : vector<4x8x32xf32> to vector<32x32xf32>
    %47 = arith.addf %46, %24 : vector<32x32xf32>
    %c0_17 = arith.constant 0 : index
    %c0_18 = arith.constant 0 : index
    %48 = vector.load %arg5[%c0_17, %c0_18] : memref<1x32xf32, #tpu.memory_space<vmem>>, vector<1x32xf32>
    %c0_19 = arith.constant 0 : index
    %c0_20 = arith.constant 0 : index
    %49 = vector.load %arg6[%c0_19, %c0_20] : memref<1x32xf32, #tpu.memory_space<vmem>>, vector<1x32xf32>
    %cst_21 = arith.constant dense<0.000000e+00> : vector<32xf32>
    %50 = vector.multi_reduction <add>, %47, %cst_21 [1] : vector<32x32xf32> to vector<32xf32>
    %51 = vector.shape_cast %50 : vector<32xf32> to vector<32x1xf32>
    %cst_22 = arith.constant 3.200000e+01 : f32
    %52 = vector.broadcast %cst_22 : f32 to vector<32x1xf32>
    %53 = arith.divf %51, %52 : vector<32x1xf32>
    %54 = vector.broadcast %53 : vector<32x1xf32> to vector<32x32xf32>
    %55 = arith.subf %47, %54 : vector<32x32xf32>
    %56 = arith.mulf %55, %55 : vector<32x32xf32>
    %cst_23 = arith.constant dense<0.000000e+00> : vector<32xf32>
    %57 = vector.multi_reduction <add>, %56, %cst_23 [1] : vector<32x32xf32> to vector<32xf32>
    %58 = vector.shape_cast %57 : vector<32xf32> to vector<32x1xf32>
    %cst_24 = arith.constant 3.200000e+01 : f32
    %59 = vector.broadcast %cst_24 : f32 to vector<32x1xf32>
    %60 = arith.divf %58, %59 : vector<32x1xf32>
    %cst_25 = arith.constant 9.99999974E-6 : f32
    %61 = vector.broadcast %cst_25 : f32 to vector<32x1xf32>
    %62 = arith.addf %60, %61 : vector<32x1xf32>
    %63 = math.rsqrt %62 : vector<32x1xf32>
    %64 = vector.broadcast %63 : vector<32x1xf32> to vector<32x32xf32>
    %65 = vector.broadcast %48 : vector<1x32xf32> to vector<32x32xf32>
    %66 = arith.mulf %64, %65 : vector<32x32xf32>
    %67 = arith.mulf %55, %66 : vector<32x32xf32>
    %68 = vector.broadcast %49 : vector<1x32xf32> to vector<32x32xf32>
    %69 = arith.addf %67, %68 : vector<32x32xf32>
    %70 = arith.truncf %69 : vector<32x32xf32> to vector<32x32xbf16>
    %c0_26 = arith.constant 0 : index
    %c0_27 = arith.constant 0 : index
    %71 = vector.load %arg7[%c0_26, %c0_27] : memref<32x64xbf16, #tpu.memory_space<vmem>>, vector<32x64xbf16>
    %cst_28 = arith.constant dense<0.000000e+00> : vector<32x64xf32>
    %72 = tpu.matmul %70, %71, %cst_28 {dimension_numbers = #tpu.dot_dimension_numbers<[1], [0], [0], [1], [0, 0, 1, 1], [], []>} : vector<32x32xbf16>, vector<32x64xbf16>, vector<32x64xf32> -> vector<32x64xf32>
    %c0_29 = arith.constant 0 : index
    %c0_30 = arith.constant 0 : index
    %73 = vector.load %arg8[%c0_29, %c0_30] : memref<1x64xf32, #tpu.memory_space<vmem>>, vector<1x64xf32>
    %74 = vector.broadcast %73 : vector<1x64xf32> to vector<32x64xf32>
    %75 = arith.addf %72, %74 : vector<32x64xf32>
    %cst_31 = arith.constant 0.000000e+00 : f32
    %76 = vector.broadcast %cst_31 : f32 to vector<32x64xf32>
    %77 = arith.maximumf %75, %76 : vector<32x64xf32>
    %78 = arith.truncf %77 : vector<32x64xf32> to vector<32x64xbf16>
    %c0_32 = arith.constant 0 : index
    %c0_33 = arith.constant 0 : index
    %79 = vector.load %arg9[%c0_32, %c0_33] : memref<64x32xbf16, #tpu.memory_space<vmem>>, vector<64x32xbf16>
    %cst_34 = arith.constant dense<0.000000e+00> : vector<32x32xf32>
    %80 = tpu.matmul %78, %79, %cst_34 {dimension_numbers = #tpu.dot_dimension_numbers<[1], [0], [0], [1], [0, 0, 1, 1], [], []>} : vector<32x64xbf16>, vector<64x32xbf16>, vector<32x32xf32> -> vector<32x32xf32>
    %c0_35 = arith.constant 0 : index
    %c0_36 = arith.constant 0 : index
    %81 = vector.load %arg10[%c0_35, %c0_36] : memref<1x32xf32, #tpu.memory_space<vmem>>, vector<1x32xf32>
    %82 = vector.broadcast %81 : vector<1x32xf32> to vector<32x32xf32>
    %83 = arith.addf %80, %82 : vector<32x32xf32>
    %84 = arith.addf %83, %69 : vector<32x32xf32>
    %85 = vector.shape_cast %84 : vector<32x32xf32> to vector<4x8x32xf32>
    %c0_37 = arith.constant 0 : index
    %c0_38 = arith.constant 0 : index
    %c0_39 = arith.constant 0 : index
    %86 = vector.load %arg11[%c0_37, %c0_38, %c0_39] : memref<4x8x32xf32, #tpu.memory_space<vmem>>, vector<4x8x32xf32>
    tpu.vector_store %arg11[%c0_37, %c0_38, %c0_39], %85 {strides = array<i32>} : memref<4x8x32xf32, #tpu.memory_space<vmem>>, vector<4x8x32xf32>,
    return
  }
  func.func @transform_0(%arg0: i32) -> (i32, i32, i32) {
    %c0_i32 = arith.constant 0 : i32
    %c0_i32_0 = arith.constant 0 : i32
    %c0_i32_1 = arith.constant 0 : i32
    return %arg0, %c0_i32, %c0_i32_0 : i32, i32, i32
  }
  func.func @transform_1(%arg0: i32) -> (i32, i32) {
    %c0_i32 = arith.constant 0 : i32
    %c0_i32_0 = arith.constant 0 : i32
    %c0_i32_1 = arith.constant 0 : i32
    return %c0_i32, %c0_i32_0 : i32, i32
  }
  func.func @transform_2(%arg0: i32) -> (i32, i32) {
    %c0_i32 = arith.constant 0 : i32
    %c0_i32_0 = arith.constant 0 : i32
    %c0_i32_1 = arith.constant 0 : i32
    return %c0_i32, %c0_i32_0 : i32, i32
  }
  func.func @transform_3(%arg0: i32) -> (i32, i32) {
    %c0_i32 = arith.constant 0 : i32
    %c0_i32_0 = arith.constant 0 : i32
    %c0_i32_1 = arith.constant 0 : i32
    return %c0_i32, %c0_i32_0 : i32, i32
  }
  func.func @transform_4(%arg0: i32) -> (i32, i32) {
    %c0_i32 = arith.constant 0 : i32
    %c0_i32_0 = arith.constant 0 : i32
    %c0_i32_1 = arith.constant 0 : i32
    return %c0_i32, %c0_i32_0 : i32, i32
  }
  func.func @transform_5(%arg0: i32) -> (i32, i32) {
    %c0_i32 = arith.constant 0 : i32
    %c0_i32_0 = arith.constant 0 : i32
    %c0_i32_1 = arith.constant 0 : i32
    return %c0_i32, %c0_i32_0 : i32, i32
  }
  func.func @transform_6(%arg0: i32) -> (i32, i32) {
    %c0_i32 = arith.constant 0 : i32
    %c0_i32_0 = arith.constant 0 : i32
    %c0_i32_1 = arith.constant 0 : i32
    return %c0_i32, %c0_i32_0 : i32, i32
  }
  func.func @transform_7(%arg0: i32) -> (i32, i32) {
    %c0_i32 = arith.constant 0 : i32
    %c0_i32_0 = arith.constant 0 : i32
    %c0_i32_1 = arith.constant 0 : i32
    return %c0_i32, %c0_i32_0 : i32, i32
  }
  func.func @transform_8(%arg0: i32) -> (i32, i32) {
    %c0_i32 = arith.constant 0 : i32
    %c0_i32_0 = arith.constant 0 : i32
    %c0_i32_1 = arith.constant 0 : i32
    return %c0_i32, %c0_i32_0 : i32, i32
  }
  func.func @transform_9(%arg0: i32) -> (i32, i32) {
    %c0_i32 = arith.constant 0 : i32
    %c0_i32_0 = arith.constant 0 : i32
    %c0_i32_1 = arith.constant 0 : i32
    return %c0_i32, %c0_i32_0 : i32, i32
  }
  func.func @transform_10(%arg0: i32) -> (i32, i32, i32) {
    %c0_i32 = arith.constant 0 : i32
    %c0_i32_0 = arith.constant 0 : i32
    %c0_i32_1 = arith.constant 0 : i32
    return %arg0, %c0_i32, %c0_i32_0 : i32, i32, i32
  }
}

</mosaic_0001>

<bundles_post_ra>
// kernel: tpu_custom_call.1
= control target key start
LH: loop header
LB: loop body
LE: loop exit
PB: predicated region body
PF: predicated region fallthrough
CT: control target
= control target key end

     0   :  { %vm47_vm0 = vcmask 261120   ;;  %s1565_s0 = inlined_call_operand.vmem [shape: bf16[4,8,32], index: 0, kind: input, shape index: {}]   ;;  %s1566_s1 = inlined_call_operand.vmem [shape: f32[1,32], index: 1, kind: input, shape index: {}]   ;;  %s1567_s2 = inlined_call_operand.vmem [shape: f32[1,32], index: 2, kind: input, shape index: {}]   ;;  %s1568_s3 = inlined_call_operand.vmem [shape: bf16[32,96], index: 3, kind: input, shape index: {}]   ;;  %s1569_s4 = inlined_call_operand.vmem [shape: f32[1,32], index: 4, kind: input, shape index: {}]   ;;  %s1570_s5 = inlined_call_operand.vmem [shape: f32[1,32], index: 5, kind: input, shape index: {}]   ;;  %s1571_s6 = inlined_call_operand.vmem [shape: bf16[32,64], index: 6, kind: input, shape index: {}]   ;;  %s1572_s7 = inlined_call_operand.vmem [shape: f32[1,64], index: 7, kind: input, shape index: {}]   ;;  %s1573_s8 = inlined_call_operand.vmem [shape: bf16[64,32], index: 8, kind: input, shape index: {}]   ;;  %s1574_s9 = inlined_call_operand.vmem [shape: f32[1,32], index: 9, kind: input, shape index: {}]   ;;  %s1575_s10 = inlined_call_operand.hbm [shape: f32[4,8,32], index: 10, kind: output, shape index: {}]  }
   0x1   :  { %v1167_v0 = vld [vmem:[%s1565_s0] sm:$0xff]   ;;  %v1174_v1 = vld [vmem:[%s1565_s0 + $0x8] sm:$0xff]  }
   0x2   :  { %v1168_v2 = vunpack.c.l.bf16 %v1167_v0  ;;  %v1172_v3 = vunpack.c.l.bf16 %v1174_v1  ;;  %v1169_v4 = vunpack.c.h.bf16 %v1167_v0  ;;  %v1173_v5 = vunpack.c.h.bf16 %v1174_v1 }
   0x4   :  { %v48_v6 = vsel %vm47_vm0, %v1168_v2, 0.0  ;;  %v54_v7 = vsel %vm47_vm0, %v1172_v3, 0.0  ;;  %v51_v8 = vsel %vm47_vm0, %v1169_v4, 0.0  ;;  %v57_v9 = vsel %vm47_vm0, %v1173_v5, 0.0 }
   0x5   :  { %49 = vadd.xlane.f32.xlu0 %v48_v6  ;;  %55 = vadd.xlane.f32.xlu1 %v54_v7 }
   0x6   :  { %15 = vsyncpa [#allocation3], 0  ;;  %v1280_v30 = vld [vmem:[%s1568_s3] sm:$0xff]   ;;  %v1281_v31 = vld [vmem:[%s1568_s3 + $0x8] sm:$0xff]   ;;  %v1344_v0 = vmov 0.0   ;;  %vm1345_vm1 = vmmov 0  }
   0x7   :  { %1205 = vmatprep.subr.bf16.mxu0 %v1280_v30  ;;  %v1134_v44 = vld [vmem:[%s1566_s1] ss:$0 sm:$0xff]  ;;  %1213 = vmatprep.subr.mxu1 %v1344_v0  ;;  %s1346_s1 = smov 96   ;;  %vm502_vm2 = vcmask 64512   ;;  %vm1054_vm3 = vcmask 523264  }
   0x8   :  { %1206 = vmatpush3.bf16.msra.mxu0 %v1280_v30  ;;  %v1135_v51 = vld [vmem:[%s1567_s2] ss:$0 sm:$0xff]  ;;  %1215 = vmatprep.mubr.msk.f32.mxu1 %vm1345_vm1, %v1344_v0  ;;  %s1347_s2 = smov 64  }
   0x9   :  { %52 = vadd.xlane.f32.xlu0 %v51_v8  ;;  %58 = vadd.xlane.f32.xlu1 %v57_v9 }
   0xa   :  { %1207 = vmatprep.subr.bf16.mxu0 %v1281_v31 }
   0xc   :  { %1208 = vmatpush3.bf16.msra.mxu0 %v1281_v31 }
   0xd   :  { %1238 = vmatprep.subr.mxu0 %v1344_v0 }
  0x92   :  { %v50_v10 = vpop.xlane.xlu0 %49  ;;  %v56_v11 = vpop.xlane.xlu1 %55 }
  0x93   :  { %v61_v12 = vmul.f32 0.03125, %v50_v10  ;;  %v63_v13 = vmul.f32 0.03125, %v56_v11 }
  0x95   :  { %v65_v14 = vsub.f32 %v1168_v2, %v61_v12  ;;  %v67_v15 = vsub.f32 %v1172_v3, %v63_v13 }
  0x96   :  { %v53_v16 = vpop.xlane.xlu0 %52  ;;  %v59_v17 = vpop.xlane.xlu1 %58 }
  0x97   :  { %v62_v18 = vmul.f32 0.03125, %v53_v16  ;;  %v64_v19 = vmul.f32 0.03125, %v59_v17  ;;  %v69_v20 = vmul.f32 %v65_v14, %v65_v14  ;;  %v71_v21 = vmul.f32 %v67_v15, %v67_v15 }
  0x99   :  { %v66_v22 = vsub.f32 %v1169_v4, %v62_v18  ;;  %v68_v23 = vsub.f32 %v1173_v5, %v64_v19  ;;  %v73_v24 = vsel %vm47_vm0, %v69_v20, 0.0  ;;  %v79_v25 = vsel %vm47_vm0, %v71_v21, 0.0 }
  0x9a   :  { %74 = vadd.xlane.f32.xlu0 %v73_v24 }
  0x9b   :  { %v70_v26 = vmul.f32 %v66_v22, %v66_v22  ;;  %v72_v27 = vmul.f32 %v68_v23, %v68_v23 }
  0x9d   :  { %v76_v28 = vsel %vm47_vm0, %v70_v26, 0.0  ;;  %v82_v29 = vsel %vm47_vm0, %v72_v27, 0.0 }
  0x9e   :  { %80 = vadd.xlane.f32.xlu0 %v79_v25  ;;  %77 = vadd.xlane.f32.xlu1 %v76_v28 }
  0xa2   :  { %83 = vadd.xlane.f32.xlu1 %v82_v29 }
 0x127   :  { %v75_v32 = vpop.xlane.xlu0 %74 }
 0x128   :  { %v85_v33 = vmul.f32 0.03125, %v75_v32 }
 0x12a   :  { %v89_v34 = vadd.f32 1e-05, %v85_v33 }
 0x12b   :  { %v78_v35 = vpop.xlane.xlu1 %77  ;;  %v81_v36 = vpop.xlane.xlu0 %80 }
 0x12c   :  { %1288 = vrsqrt.f32 %v89_v34  ;;  %v86_v37 = vmul.f32 0.03125, %v78_v35  ;;  %v87_v38 = vmul.f32 0.03125, %v81_v36 }
 0x12e   :  { %v90_v39 = vadd.f32 1e-05, %v86_v37  ;;  %v91_v40 = vadd.f32 1e-05, %v87_v38 }
 0x12f   :  { %v84_v41 = vpop.xlane.xlu1 %83 }
 0x130   :  { %1290 = vrsqrt.f32 %v90_v39  ;;  %v88_v42 = vmul.f32 0.03125, %v84_v41 }
 0x131   :  { %1292 = vrsqrt.f32 %v91_v40 }
 0x132   :  { %v92_v43 = vadd.f32 1e-05, %v88_v42 }
 0x134   :  { %1294 = vrsqrt.f32 %v92_v43 }
 0x136   :  { %v1289_v45 = vpop.eup %1288 }
 0x137   :  { %v103_v46 = vmul.f32 %v1289_v45, %v1134_v44 }
 0x139   :  { %v107_v50 = vmul.f32 %v103_v46, %v65_v14 }
 0x13a   :  { %v1291_v47 = vpop.eup %1290 }
 0x13b   :  { %v1293_v48 = vpop.eup %1292  ;;  %v104_v49 = vmul.f32 %v1291_v47, %v1134_v44  ;;  %v1432_v55 = vadd.f32 %v1135_v51, %v107_v50 }
 0x13c   :  { %v105_v52 = vmul.f32 %v1293_v48, %v1134_v44 }
 0x13d   :  { %v108_v53 = vmul.f32 %v104_v49, %v66_v22 }
 0x13e   :  { %v1295_v54 = vpop.eup %1294  ;;  %v109_v58 = vmul.f32 %v105_v52, %v67_v15 }
 0x13f   :  { %v1434_v56 = vadd.f32 %v1135_v51, %v108_v53  ;;  %v106_v57 = vmul.f32 %v1295_v54, %v1134_v44 }
 0x140   :  { %v1439_v61 = vadd.f32 %v1135_v51, %v109_v58 }
 0x141   :  { %v121_v59 = vpack.c.bf16 %v1434_v56, %v1432_v55  ;;  %v110_v60 = vmul.f32 %v106_v57, %v68_v23 }
 0x143   :  { %1209 = vmatprep.mubr.msk.bf16.mxu0 %vm47_vm0, %v121_v59  ;;  %v1441_v62 = vadd.f32 %v1135_v51, %v110_v60 }
 0x145   :  { %v122_v63 = vpack.c.bf16 %v1441_v62, %v1439_v61 }
 0x147   :  { %1210 = vmatmul.mubr.msk.bf16.vlgmr.msra.gmra.mrb[0].mxu0 %vm47_vm0, %v122_v63 }
 0x148   :  { %1240 = vmatprep.mubr.msk.f32.mxu0 %vm1345_vm1, %v1344_v0 }
 0x21a   :  { %v1452_v1 = vpop.f32.mrb[0].mxu0 }
 0x21b   :  { %v1454_v2 = vpop.f32.mrb[1].mxu0 }
 0x21c   :  { %195 = vrot.lane.b32.xlu0 %v1454_v2, %s1346_s1  ;;  %v1457_v3 = vpop.f32.mrb[2].mxu0 }
 0x21d   :  { %v182_v4 = vpop.f32.mrb[3].mxu0 }
 0x21e   :  { %272 = vrot.lane.b32.xlu1 %v182_v4, %s1346_s1 }
 0x222   :  { %349 = vrot.lane.b32.xlu1 %v1452_v1, %s1346_s1 }
 0x226   :  { %426 = vrot.lane.b32.xlu1 %v1457_v3, %s1346_s1 }
 0x28e   :  { %v196_v5 = vpop.permute.xlu0 %195 }
 0x28f   :  { %1214 = vmatpush3.xpose.msk.msra.mxu1 %vm47_vm0, %v196_v5 }
 0x290   :  { %v273_v6 = vpop.permute.xlu1 %272  ;;  %1218 = vmatprep.subr.mxu1 %v1344_v0 }
 0x292   :  { %1216 = vmatmul.mubr.msk.f32.vlgmr.msra.gmra.mrb[0].mxu1 %vm47_vm0, %v1454_v2 }
 0x293   :  { %1219 = vmatpush3.xpose.msk.msra.mxu1 %vm47_vm0, %v273_v6  ;;  %1220 = vmatprep.mubr.msk.f32.mxu1 %vm1345_vm1, %v1344_v0 }
 0x294   :  { %v350_v7 = vpop.permute.xlu1 %349  ;;  %1223 = vmatprep.subr.mxu1 %v1344_v0 }
 0x296   :  { %1221 = vmatmul.mubr.msk.f32.vlgmr.msra.gmra.mrb[2].mxu1 %vm47_vm0, %v182_v4 }
 0x297   :  { %1224 = vmatpush3.xpose.msk.msra.mxu1 %vm47_vm0, %v350_v7  ;;  %1225 = vmatprep.mubr.msk.f32.mxu1 %vm1345_vm1, %v1344_v0 }
 0x298   :  { %1228 = vmatprep.subr.mxu1 %v1344_v0  ;;  %v427_v8 = vpop.permute.xlu1 %426 }
 0x29a   :  { %1226 = vmatmul.mubr.msk.f32.vlgmr.msra.gmra.mrb[4].mxu1 %vm47_vm0, %v1452_v1 }
 0x29b   :  { %1229 = vmatpush3.xpose.msk.msra.mxu1 %vm47_vm0, %v427_v8  ;;  %1230 = vmatprep.mubr.msk.f32.mxu1 %vm1345_vm1, %v1344_v0 }
 0x29c   :  { %1233 = vmatprep.subr.mxu1 %v1344_v0 }
 0x29e   :  { %1231 = vmatmul.mubr.msk.f32.vlgmr.msra.gmra.mrb[6].mxu1 %vm47_vm0, %v1457_v3 }
 0x29f   :  { %1235 = vmatprep.mubr.msk.f32.mxu1 %vm1345_vm1, %v1344_v0 }
 0x365   :  { %v267_v9 = vpop.f32.mrb[0].mxu1 }
 0x366   :  { %v1217_v10 = vpop.f32.mrb[1].mxu1  ;;  %v503_v11 = vsel %vm502_vm2, %v267_v9, -inf }
 0x367   :  { %504 = vmax.xlane.f32.xlu0 %v503_v11 }
 0x369   :  { %v344_v12 = vpop.f32.mrb[2].mxu1 }
 0x36a   :  { %v1222_v13 = vpop.f32.mrb[3].mxu1  ;;  %v506_v14 = vsel %vm502_vm2, %v344_v12, -inf }
 0x36b   :  { %507 = vmax.xlane.f32.xlu1 %v506_v14 }
 0x36d   :  { %v421_v15 = vpop.f32.mrb[4].mxu1 }
 0x36e   :  { %v1227_v16 = vpop.f32.mrb[5].mxu1  ;;  %v509_v17 = vsel %vm502_vm2, %v421_v15, -inf }
 0x36f   :  { %510 = vmax.xlane.f32.xlu0 %v509_v17 }
 0x371   :  { %v498_v18 = vpop.f32.mrb[6].mxu1 }
 0x372   :  { %v1232_v19 = vpop.f32.mrb[7].mxu1  ;;  %v512_v20 = vsel %vm502_vm2, %v498_v18, -inf }
 0x373   :  { %513 = vmax.xlane.f32.xlu0 %v512_v20 }
 0x3f4   :  { %v505_v21 = vpop.xlane.xlu0 %504 }
 0x3f5   :  { %v515_v22 = vsub.f32 %v267_v9, %v505_v21 }
 0x3f7   :  { %v519_v23 = vmul.f32 1.442695, %v515_v22 }
 0x3f8   :  { %v508_v24 = vpop.xlane.xlu1 %507 }
 0x3f9   :  { %1296 = vpow2.f32 %v519_v23  ;;  %v516_v25 = vsub.f32 %v344_v12, %v508_v24 }
 0x3fb   :  { %v521_v26 = vmul.f32 1.442695, %v516_v25 }
 0x3fc   :  { %v511_v27 = vpop.xlane.xlu0 %510 }
 0x3fd   :  { %1298 = vpow2.f32 %v521_v26  ;;  %v517_v28 = vsub.f32 %v421_v15, %v511_v27 }
 0x3ff   :  { %v523_v29 = vmul.f32 1.442695, %v517_v28 }
 0x400   :  { %v514_v36 = vpop.xlane.xlu0 %513 }
 0x401   :  { %1300 = vpow2.f32 %v523_v29  ;;  %v518_v37 = vsub.f32 %v498_v18, %v514_v36  ;;  %v1282_v29 = vld [vmem:[%s1571_s6] sm:$0xff]  }
 0x403   :  { %v1297_v30 = vpop.eup %1296  ;;  %v525_v38 = vmul.f32 1.442695, %v518_v37 }
 0x404   :  { %v527_v31 = vsel %vm502_vm2, %v1297_v30, 0.0 }
 0x405   :  { %528 = vadd.xlane.f32.xlu0 %v527_v31  ;;  %1302 = vpow2.f32 %v525_v38  ;;  %v1284_v31 = vld [vmem:[%s1573_s8] sm:$0xff]  }
 0x407   :  { %v1299_v32 = vpop.eup %1298 }
 0x408   :  { %v530_v33 = vsel %vm502_vm2, %v1299_v32, 0.0 }
 0x409   :  { %531 = vadd.xlane.f32.xlu1 %v530_v33 }
 0x40b   :  { %v1301_v34 = vpop.eup %1300 }
 0x40c   :  { %v533_v35 = vsel %vm502_vm2, %v1301_v34, 0.0 }
 0x40d   :  { %534 = vadd.xlane.f32.xlu0 %v533_v35 }
 0x40f   :  { %v1303_v39 = vpop.eup %1302 }
 0x410   :  { %v536_v40 = vsel %vm502_vm2, %v1303_v39, 0.0 }
 0x41a   :  { %623 = vrot.lane.b32.xlu1 %v182_v4, %s1347_s2 }
 0x41e   :  { %699 = vrot.lane.b32.xlu1 %v1452_v1, %s1347_s2 }
 0x423   :  { %547 = vrot.lane.b32.xlu0 %v1454_v2, %s1347_s2 }
 0x442   :  { %537 = vadd.xlane.f32.xlu1 %v536_v40 }
 0x453   :  { %775 = vrot.lane.b32.xlu1 %v1457_v3, %s1347_s2 }
 0x492   :  { %v529_v41 = vpop.xlane.xlu0 %528 }
 0x493   :  { %1304 = vrcp.f32 %v529_v41 }
 0x496   :  { %v532_v42 = vpop.xlane.xlu1 %531 }
 0x497   :  { %1306 = vrcp.f32 %v532_v42 }
 0x49a   :  { %v535_v43 = vpop.xlane.xlu0 %534  ;;  %v624_v44 = vpop.permute.xlu1 %623 }
 0x49b   :  { %1308 = vrcp.f32 %v535_v43  ;;  %1239 = vmatpush3.msra.mxu0 %v624_v44 }
 0x49c   :  { %1248 = vmatprep.subr.mxu0 %v1344_v0 }
 0x49d   :  { %v1305_v45 = vpop.eup %1304 }
 0x49e   :  { %v543_v46 = vmul.f32 %v1305_v45, %v1297_v30  ;;  %v548_v47 = vpop.permute.xlu0 %547  ;;  %v700_v48 = vpop.permute.xlu1 %699  ;;  %v1283_v30 = vld [vmem:[%s1571_s6 + $0x8] sm:$0xff]   ;;  %v1153_v45 = vld [vmem:[%s1570_s5] ss:$0 sm:$0xff] }
 0x49f   :  { %1234 = vmatpush3.msra.mxu1 %v548_v47 }
 0x4a0   :  { %1236 = vmatmul.mubr.msk.f32.vlgmr.msra.gmra.mrb[8].mxu1 %vm502_vm2, %v543_v46  ;;  %1243 = vmatprep.subr.mxu1 %v1344_v0 }
 0x4a1   :  { %v1307_v49 = vpop.eup %1306  ;;  %1244 = vmatpush3.msra.mxu1 %v700_v48  ;;  %1245 = vmatprep.mubr.msk.f32.mxu1 %vm1345_vm1, %v1344_v0 }
 0x4a2   :  { %v544_v50 = vmul.f32 %v1307_v49, %v1299_v32  ;;  %1253 = vmatprep.subr.bf16.mxu1 %v1282_v29  ;;  %v1285_v32 = vld [vmem:[%s1573_s8 + $0x8] sm:$0xff]  }
 0x4a4   :  { %1241 = vmatmul.mubr.msk.f32.vlgmr.msra.gmra.mrb[4].mxu0 %vm502_vm2, %v544_v50 }
 0x4a5   :  { %v1309_v51 = vpop.eup %1308  ;;  %1250 = vmatprep.mubr.msk.f32.mxu0 %vm1345_vm1, %v1344_v0 }
 0x4a6   :  { %v545_v52 = vmul.f32 %v1309_v51, %v1301_v34 }
 0x4a8   :  { %1246 = vmatmul.mubr.msk.f32.vlgmr.msra.gmra.mrb[10].mxu1 %vm502_vm2, %v545_v52 }
 0x4a9   :  { %1254 = vmatpush3.bf16.msra.mxu1 %v1282_v29 }
 0x4aa   :  { %1255 = vmatprep.subr.bf16.mxu1 %v1283_v30 }
 0x4ad   :  { %1256 = vmatpush3.bf16.msra.mxu1 %v1283_v30 }
 0x4cf   :  { %v538_v53 = vpop.xlane.xlu1 %537 }
 0x4d0   :  { %1310 = vrcp.f32 %v538_v53 }
 0x4d3   :  { %v776_v54 = vpop.permute.xlu1 %775 }
 0x4d4   :  { %1249 = vmatpush3.msra.mxu0 %v776_v54 }
 0x4d5   :  { %1261 = vmatprep.subr.bf16.mxu0 %v1284_v31 }
 0x4da   :  { %v1311_v57 = vpop.eup %1310 }
 0x4db   :  { %v546_v58 = vmul.f32 %v1311_v57, %v1303_v39  ;;  %v1152_v39 = vld [vmem:[%s1569_s4] ss:$0 sm:$0xff] }
 0x4dd   :  { %1251 = vmatmul.mubr.msk.f32.vlgmr.msra.gmra.mrb[6].mxu0 %vm502_vm2, %v546_v58 }
 0x4de   :  { %1262 = vmatpush3.bf16.msra.mxu0 %v1284_v31 }
 0x4df   :  { %1263 = vmatprep.subr.bf16.mxu0 %v1285_v32 }
 0x4e2   :  { %1264 = vmatpush3.bf16.msra.mxu0 %v1285_v32 }
 0x573   :  { %v619_v59 = vpop.f32.mrb[8].mxu1 }
 0x574   :  { %v851_v60 = vadd.f32 %v619_v59, %v1432_v55  ;;  %v1237_v63 = vpop.f32.mrb[9].mxu1 }
 0x576   :  { %v857_v1 = vsel %vm47_vm0, %v851_v60, 0.0 }
 0x577   :  { %858 = vadd.xlane.f32.xlu0 %v857_v1  ;;  %v695_v2 = vpop.f32.mrb[4].mxu0 }
 0x578   :  { %v852_v0 = vadd.f32 %v695_v2, %v1434_v56  ;;  %v1242_v3 = vpop.f32.mrb[5].mxu0 }
 0x57a   :  { %v860_v4 = vsel %vm47_vm0, %v852_v0, 0.0 }
 0x57b   :  { %861 = vadd.xlane.f32.xlu1 %v860_v4  ;;  %v771_v5 = vpop.f32.mrb[10].mxu1 }
 0x57c   :  { %v853_v6 = vadd.f32 %v771_v5, %v1439_v61  ;;  %v1247_v7 = vpop.f32.mrb[11].mxu1  ;;  %v1286_v5 = vld [vmem:[%s1573_s8 + $0x10] sm:$0xff]  }
 0x57d   :  { %1265 = vmatprep.subr.bf16.mxu0 %v1286_v5  ;;  %v1154_v7 = vld [vmem:[%s1572_s7] ss:$0 sm:$0xff]  ;;  %s1348_s7 = smov [#allocation2]  }
 0x57e   :  { %v863_v8 = vsel %vm47_vm0, %v853_v6, 0.0  ;;  %1266 = vmatpush3.bf16.msra.mxu0 %v1286_v5  ;;  %s1123_s18 = sshll.u32 %s1348_s7, 4  ;;  %s1124_s18 = int_to_ptr.vmem [resolvable:$true] %s1123_s18 }
 0x57f   :  { %864 = vadd.xlane.f32.xlu0 %v863_v8  ;;  %p1325_p1 = scmp.lt.s32.totalorder %s1124_s18, %s1124_s18 }
 0x5b0   :  { %v847_v9 = vpop.f32.mrb[6].mxu0 }
 0x5b1   :  { %v854_v55 = vadd.f32 %v847_v9, %v1441_v62  ;;  %v1252_v10 = vpop.f32.mrb[7].mxu0 }
 0x5b3   :  { %v866_v11 = vsel %vm47_vm0, %v854_v55, 0.0 }
 0x5b4   :  { %867 = vadd.xlane.f32.xlu0 %v866_v11 }
 0x604   :  { %v859_v12 = vpop.xlane.xlu0 %858 }
 0x605   :  { %v869_v56 = vmul.f32 0.03125, %v859_v12 }
 0x607   :  { %v873_v13 = vsub.f32 %v851_v60, %v869_v56 }
 0x608   :  { %v862_v14 = vpop.xlane.xlu1 %861 }
 0x609   :  { %v870_v15 = vmul.f32 0.03125, %v862_v14  ;;  %v877_v16 = vmul.f32 %v873_v13, %v873_v13 }
 0x60b   :  { %v874_v17 = vsub.f32 %v852_v0, %v870_v15  ;;  %v881_v61 = vsel %vm47_vm0, %v877_v16, 0.0 }
 0x60c   :  { %v865_v18 = vpop.xlane.xlu0 %864  ;;  %882 = vadd.xlane.f32.xlu0 %v881_v61 }
 0x60d   :  { %v871_v19 = vmul.f32 0.03125, %v865_v18  ;;  %v878_v20 = vmul.f32 %v874_v17, %v874_v17 }
 0x60f   :  { %v875_v21 = vsub.f32 %v853_v6, %v871_v19  ;;  %v884_v62 = vsel %vm47_vm0, %v878_v20, 0.0  ;;  %v1287_v6 = vld [vmem:[%s1573_s8 + $0x18] sm:$0xff]   ;;  %v1159_v19 = vld [vmem:[%s1574_s9] ss:$0 sm:$0xff]  ;;  %s1320_s9 = scalar_lea.vmem %s1124_s18, 512 }
 0x610   :  { %885 = vadd.xlane.f32.xlu1 %v884_v62  ;;  %1267 = vmatprep.subr.bf16.mxu0 %v1287_v6  ;;  %p1321_p0 = scmp.ne.s32.totalorder %s1124_s18, %s1320_s9  ;;  %p1326_p2 = scmp.lt.s32.totalorder %s1320_s9, %s1320_s9 }
 0x611   :  { %v879_v22 = vmul.f32 %v875_v21, %v875_v21  ;;  %1268 = vmatpush3.bf16.msra.mxu0 %v1287_v6 }
 0x612   :  { %p1327_p3 = por %p1326_p2, %p1325_p1 }
 0x613   :  { %v887_v23 = vsel %vm47_vm0, %v879_v22, 0.0 }
 0x614   :  { %888 = vadd.xlane.f32.xlu0 %v887_v23  ;;  %p1328_p4 = pnand %p1327_p3, %p1321_p0 }
 0x641   :  { %v868_v24 = vpop.xlane.xlu0 %867 }
 0x642   :  { %v872_v25 = vmul.f32 0.03125, %v868_v24 }
 0x644   :  { %v876_v26 = vsub.f32 %v854_v55, %v872_v25 }
 0x646   :  { %v880_v27 = vmul.f32 %v876_v26, %v876_v26 }
 0x648   :  { %v890_v28 = vsel %vm47_vm0, %v880_v27, 0.0 }
 0x649   :  { %891 = vadd.xlane.f32.xlu1 %v890_v28 }
 0x699   :  { %v883_v33 = vpop.xlane.xlu0 %882 }
 0x69a   :  { %v893_v34 = vmul.f32 0.03125, %v883_v33 }
 0x69c   :  { %v897_v35 = vadd.f32 1e-05, %v893_v34 }
 0x69d   :  { %v886_v36 = vpop.xlane.xlu1 %885 }
 0x69e   :  { %1312 = vrsqrt.f32 %v897_v35  ;;  %v894_v37 = vmul.f32 0.03125, %v886_v36 }
 0x6a0   :  { %v898_v38 = vadd.f32 1e-05, %v894_v37 }
 0x6a1   :  { %v889_v50 = vpop.xlane.xlu0 %888 }
 0x6a2   :  { %1314 = vrsqrt.f32 %v898_v38  ;;  %v895_v51 = vmul.f32 0.03125, %v889_v50 }
 0x6a4   :  { %v899_v52 = vadd.f32 1e-05, %v895_v51 }
 0x6a6   :  { %1316 = vrsqrt.f32 %v899_v52 }
 0x6a8   :  { %v1313_v40 = vpop.eup %1312 }
 0x6a9   :  { %v911_v41 = vmul.f32 %v1313_v40, %v1152_v39 }
 0x6ab   :  { %v915_v44 = vmul.f32 %v911_v41, %v873_v13 }
 0x6ac   :  { %v1315_v42 = vpop.eup %1314 }
 0x6ad   :  { %v912_v43 = vmul.f32 %v1315_v42, %v1152_v39  ;;  %v925_v47 = vadd.f32 %v1153_v45, %v915_v44 }
 0x6af   :  { %v916_v46 = vmul.f32 %v912_v43, %v874_v17 }
 0x6b0   :  { %v1317_v58 = vpop.eup %1316 }
 0x6b1   :  { %v926_v48 = vadd.f32 %v1153_v45, %v916_v46  ;;  %v913_v59 = vmul.f32 %v1317_v58, %v1152_v39 }
 0x6b3   :  { %v929_v49 = vpack.c.bf16 %v926_v48, %v925_v47  ;;  %v917_v63 = vmul.f32 %v913_v59, %v875_v21 }
 0x6b5   :  { %1257 = vmatprep.mubr.msk.bf16.mxu1 %vm47_vm0, %v929_v49  ;;  %v927_v0 = vadd.f32 %v1153_v45, %v917_v63 }
 0x6d6   :  { %v892_v53 = vpop.xlane.xlu1 %891 }
 0x6d7   :  { %v896_v54 = vmul.f32 0.03125, %v892_v53 }
 0x6d9   :  { %v900_v57 = vadd.f32 1e-05, %v896_v54 }
 0x6db   :  { %1318 = vrsqrt.f32 %v900_v57 }
 0x6e5   :  { %v1319_v60 = vpop.eup %1318 }
 0x6e6   :  { %v914_v1 = vmul.f32 %v1319_v60, %v1152_v39 }
 0x6e8   :  { %v918_v2 = vmul.f32 %v914_v1, %v876_v26 }
 0x6ea   :  { %v928_v3 = vadd.f32 %v1153_v45, %v918_v2 }
 0x6ec   :  { %v930_v4 = vpack.c.bf16 %v928_v3, %v927_v0 }
 0x6ee   :  { %1258 = vmatmul.mubr.msk.bf16.vlgmr.msra.gmra.mrb[12].mxu1 %vm47_vm0, %v930_v4 }
 0x7c1   :  { %v1259_v8 = vpop.f32.mrb[12].mxu1 }
 0x7c2   :  { %v1003_v9 = vadd.f32 %v1259_v8, %v1154_v7  ;;  %v994_v55 = vpop.f32.mrb[13].mxu1 }
 0x7c3   :  { %v995_v10 = vadd.f32 %v1154_v7, %v994_v55  ;;  %v1260_v11 = vpop.f32.mrb[14].mxu1 }
 0x7c4   :  { %v1006_v12 = vadd.f32 %v1260_v11, %v1154_v7  ;;  %v997_v56 = vpop.f32.mrb[15].mxu1  ;;  %v1011_v14 = vmax.f32 %v1003_v9, 0.0 }
 0x7c5   :  { %v998_v13 = vadd.f32 %v1154_v7, %v997_v56  ;;  %v1009_v16 = vmax.f32 %v995_v10, 0.0 }
 0x7c6   :  { %v1012_v15 = vmax.f32 %v1006_v12, 0.0 }
 0x7c7   :  { %v1010_v17 = vmax.f32 %v998_v13, 0.0 }
 0x7c8   :  { %v1014_v61 = vpack.c.bf16 %v1012_v15, %v1011_v14 }
 0x7c9   :  { %v1013_v18 = vpack.c.bf16 %v1010_v17, %v1009_v16 }
 0x7cb   :  { %1269 = vmatprep.mubr.msk.bf16.mxu0 %vm1054_vm3, %v1013_v18 }
 0x7cc   :  { %1270 = vmatmul.mubr.msk.bf16.vlgmr.msra.gmra.mrb[8].mxu0 %vm1054_vm3, %v1014_v61 }
 0x89f   :  { %v1271_v20 = vpop.f32.mrb[8].mxu0 }
 0x8a0   :  { %v1104_v21 = vadd.f32 %v1271_v20, %v1159_v19  ;;  %v1095_v62 = vpop.f32.mrb[9].mxu0 }
 0x8a1   :  { %v1096_v22 = vadd.f32 %v1159_v19, %v1095_v62  ;;  %v1272_v23 = vpop.f32.mrb[10].mxu0 }
 0x8a2   :  { %v1112_v24 = vadd.f32 %v1104_v21, %v927_v0  ;;  %v1107_v25 = vadd.f32 %v1272_v23, %v1159_v19  ;;  %v1098_v26 = vpop.f32.mrb[11].mxu0 }
 0x8a3   :  { %v1110_v27 = vadd.f32 %v1096_v22, %v925_v47  ;;  %v1099_v28 = vadd.f32 %v1159_v19, %v1098_v26 }
 0x8a4   :  { %1116 = vst.msk [vmem:[#allocation2 + $0x10] sm:$0xff] %vm47_vm0, %v1112_v24  ;;  %v1113_v29 = vadd.f32 %v1107_v25, %v928_v3 }
 0x8a5   :  { %1114 = vst.msk [vmem:[#allocation2] sm:$0xff] %vm47_vm0, %v1110_v27  ;;  %v1111_v30 = vadd.f32 %v1099_v28, %v926_v48 }
 0x8a6   :  { %1117 = vst.msk [vmem:[#allocation2 + $0x18] sm:$0xff] %vm47_vm0, %v1113_v29 }
 0x8a7   :  { %1115 = vst.msk [vmem:[#allocation2 + $0x8] sm:$0xff] %vm47_vm0, %v1111_v30 }
 0x8a8   :  { %1331 = shalt.err (!%p1328_p4)
}
 0x8a9   :  { %s1332_s20 = scalar_lea.hbm %s1575_s10, 512 }
 0x8aa   :  { %p1333_p5 = scmp.ne.s32.totalorder %s1575_s10, %s1332_s20  ;;  %p1336_p6 = scmp.lt.u32.totalorder %s1332_s20, %s1575_s10 }
 0x8ac   :  { %p1338_p7 = pnand %p1336_p6, %p1333_p5 }
 0x8ae   :  { %1341 = shalt.err (!%p1338_p7)
}
 0x8af   :  { %s1349_s23 = smov 128   ;;  %s1350_s24 = smov 8  }
 0x8b0   :  { %1129 = dma.vmem_to_hbm [thread:$0]  %s1124_s18, 512, %s1575_s10, [#allocation3], %s1349_s23, %s1349_s23, %s1350_s24  }
 0x8b1   :  { %1342 = dma.done.wait [#allocation3], 512  }
 0x8b2   :  { %1343 = vsyncadd [#allocation3], 4294966784 }
 0x8b3   :  { %1133 = vsyncpa [#allocation3], 1 }

</bundles_post_ra>
